<compile_context>
chip_gen: v7x
topology: tpu7x:2x2x1
jax: 0.10.0
libtpu: 0.0.40
codegen_flags: <defaults>
</compile_context>

<pallas_src>
import functools

import jax
import jax.numpy as jnp
from jax.experimental import pallas as pl
from jax.experimental.pallas import tpu as pltpu

_LANE = 128


def _round_up(a, m):
    return ((a + m - 1) // m) * m


def _mlp_kernel(x_ref, w_in_ref, b_in_ref, w_h_ref, b_h_ref, w_out_ref, b_out_ref,
                o_ref, *, num_hidden_layers, input_size, lane_chunk, tanh_dtype):
    """Whole-MLP fusion, batch-on-lanes layout (PyTorch (out, in) weights):

      x_ref:     (IN, TB)          w_in_ref:  (H, IN)    b_in_ref:  (H, 1)
      w_h_ref:   (L, H, H)         b_h_ref:   (L, H, 1)
      w_out_ref: (OUT, H)          b_out_ref: (OUT, 1)
      o_ref:     (OUT, TB)
    """
    # Weights/biases are tiny: load once per grid step, reuse for every chunk.
    w_in = w_in_ref[...].astype(jnp.float32)                       # (H, IN)
    b_in = b_in_ref[...].astype(jnp.float32)                       # (H, 1) lane-broadcast
    w_h = [w_h_ref[l] for l in range(num_hidden_layers)]           # each (H, H)
    b_h = [b_h_ref[l].astype(jnp.float32) for l in range(num_hidden_layers)]
    w_out = w_out_ref[...]                                         # (OUT, H)
    b_out = b_out_ref[...].astype(jnp.float32)                     # (OUT, 1)

    tb = x_ref.shape[-1]
    num_chunks = tb // lane_chunk                                  # static

    # Fully static (unrolled) chunk loop: every slice start is a compile-time
    # multiple of 128, so all loads/stores are lane-aligned and lane-dense and
    # the per-chunk live set stays small (no vreg spills even at tb=4096).
    for c in range(num_chunks):
        lo = c * lane_chunk
        x = x_ref[:, pl.ds(lo, lane_chunk)].astype(jnp.float32)    # (IN, C)

        if input_size <= 8:
            # linear_in with tiny contraction dim: VPU broadcast FMAs, skip the MXU.
            h = w_in[:, 0:1] * x[0:1, :]                           # (H,1)*(1,C) -> (H,C)
            for k in range(1, input_size):
                h = h + w_in[:, k:k + 1] * x[k:k + 1, :]
        else:
            h = jnp.dot(w_in, x, preferred_element_type=jnp.float32)
        h = h + b_in
        # (No activation after linear_in — matches the PyTorch reference.)

        for l in range(num_hidden_layers):
            z = jnp.dot(w_h[l], h.astype(w_h[l].dtype),
                        preferred_element_type=jnp.float32)        # (H, C), f32 acc
            z = z + b_h[l]
            if tanh_dtype == jnp.float32:
                h = jnp.tanh(z)                                    # f32 tanh on the EUP
            else:
                h = jnp.tanh(z.astype(tanh_dtype))                 # bf16 tanh (v6e/v7x only)

        out = jnp.dot(w_out, h.astype(w_out.dtype),
                      preferred_element_type=jnp.float32)          # (OUT, C)
        out = out + b_out
        o_ref[:, pl.ds(lo, lane_chunk)] = out.astype(o_ref.dtype)  # lane-dense store


@functools.partial(jax.jit, static_argnames=("batch_tile", "lane_chunk", "bf16_tanh"))
def mlp_forward(x, params, *, batch_tile=4096, lane_chunk=256, bf16_tanh=False):
    """MLP forward as a single Pallas TPU kernel (one jit dispatch end-to-end).

    x: (B, input_size)
    params (PyTorch nn.Linear layout, weight = (out_features, in_features)):
      w_in (H, IN), b_in (H, 1), w_h (L, H, H), b_h (L, H, 1),
      w_out (OUT, H), b_out (OUT, 1)

    On v6e/v7x the params may be bf16 (f32 accumulation is kept); on v5e keep
    f32 (and bf16_tanh=False).
    """
    B, IN = x.shape
    H = params["w_in"].shape[0]
    OUT = params["w_out"].shape[0]
    L = params["w_h"].shape[0]

    batch_tile = max(_LANE, _round_up(batch_tile, _LANE))
    lane_chunk = max(_LANE, _round_up(lane_chunk, _LANE))

    # Grid sizing:
    #  * tiny batches (< 256): one grid step (no per-step ~0.35us overhead),
    #  * B >= 256: at least 2 steps so both v7x TensorCores get work,
    #  * very large batches: tiles of `batch_tile`, chunked internally.
    if B < 2 * _LANE:
        tb = _round_up(max(B, 1), _LANE)
    else:
        tb = min(batch_tile, _round_up(pl.cdiv(B, 2), _LANE))
    chunk = min(lane_chunk, tb)
    tb = _round_up(tb, chunk)                       # tb is an exact multiple of chunk
    b_pad = _round_up(B, tb)
    grid = (b_pad // tb,)

    # Batch-on-lanes: transpose/pad/slice all fuse under this jit (single dispatch).
    x_t = jnp.transpose(x)                          # (IN, B)
    if b_pad != B:
        x_t = jnp.pad(x_t, ((0, 0), (0, b_pad - B)))

    kernel = functools.partial(
        _mlp_kernel, num_hidden_layers=L, input_size=IN, lane_chunk=chunk,
        tanh_dtype=jnp.bfloat16 if bf16_tanh else jnp.float32)

    def full(shape):
        return pl.BlockSpec(shape, lambda i, _s=shape: (0,) * len(_s))

    itemsize = lambda a: jnp.dtype(a.dtype).itemsize
    weight_bytes = sum(int(p.size) * itemsize(p) for p in params.values())
    cost = pl.CostEstimate(
        flops=2 * b_pad * (IN * H + L * H * H + H * OUT),
        transcendentals=b_pad * L * H,
        bytes_accessed=b_pad * (IN + OUT) * itemsize(x) + grid[0] * weight_bytes,
    )

    out_t = pl.pallas_call(
        kernel,
        out_shape=jax.ShapeDtypeStruct((OUT, b_pad), x.dtype),
        grid_spec=pltpu.PrefetchScalarGridSpec(
            num_scalar_prefetch=0,
            grid=grid,
            in_specs=[
                pl.BlockSpec((IN, tb), lambda i: (0, i)),   # x^T, lane-tiled on batch
                full((H, IN)),                              # w_in  (VMEM-resident)
                full((H, 1)),                               # b_in
                full((L, H, H)),                            # w_h
                full((L, H, 1)),                            # b_h
                full((OUT, H)),                             # w_out
                full((OUT, 1)),                             # b_out
            ],
            out_specs=pl.BlockSpec((OUT, tb), lambda i: (0, i)),
        ),
        compiler_params=pltpu.CompilerParams(
            dimension_semantics=("parallel",)),             # shard batch tiles across TCs
        cost_estimate=cost,
    )(x_t, params["w_in"], params["b_in"], params["w_h"], params["b_h"],
      params["w_out"], params["b_out"])

    return jnp.transpose(out_t)[:B]                          # (B, OUT)


def init_params(key, input_size, output_size, hidden_layers, hidden_units,
                dtype=jnp.float32):
    """Synthetic parameters in PyTorch nn.Linear layout: weight = (out, in)."""
    ks = jax.random.split(key, 6)
    s_in = 1.0 / jnp.sqrt(input_size)
    s_h = 1.0 / jnp.sqrt(hidden_units)
    u = lambda k, shape, s: jax.random.uniform(k, shape, jnp.float32, -s, s).astype(dtype)
    return {
        "w_in": u(ks[0], (hidden_units, input_size), s_in),
        "b_in": u(ks[1], (hidden_units, 1), s_in),
        "w_h": u(ks[2], (hidden_layers, hidden_units, hidden_units), s_h),
        "b_h": u(ks[3], (hidden_layers, hidden_units, 1), s_h),
        "w_out": u(ks[4], (output_size, hidden_units), s_h),
        "b_out": u(ks[5], (output_size, 1), s_h),
    }


def mlp_reference(x, params):
    """Plain-JAX reference mirroring PyTorch forward semantics (y = x @ W^T + b)."""
    f32 = lambda a: a.astype(jnp.float32)
    h = x @ f32(params["w_in"]).T + f32(params["b_in"])[:, 0]
    for l in range(params["w_h"].shape[0]):
        h = jnp.tanh(h @ f32(params["w_h"][l]).T + f32(params["b_h"][l])[:, 0])
    return h @ f32(params["w_out"]).T + f32(params["b_out"])[:, 0]


if __name__ == "__main__":
    # PINN-style config: 2-D input (x, y), 2-D output (Re/Im of scattered field),
    # 3 hidden tanh layers of 32 units.  batch=1000 exercises zero-padding,
    # a 2-step grid (both v7x TensorCores), and the 2-chunk inner lane loop.
    input_size, output_size = 2, 2
    hidden_layers, hidden_units = 3, 32
    batch = 1000

    key = jax.random.PRNGKey(0)
    k_x, k_p = jax.random.split(key)
    x = jax.random.normal(k_x, (batch, input_size), jnp.float32)
    params = init_params(k_p, input_size, output_size, hidden_layers, hidden_units)

    out = mlp_forward(x, params)           # f32 weights, f32 tanh (v5e-safe default)
    out = jax.block_until_ready(out)

    ref = mlp_reference(x, params)
    assert out.shape == (batch, output_size)
    assert jnp.allclose(out, ref, atol=1e-5, rtol=1e-5), "mismatch vs reference"

    print("KERNEL_OK")
</pallas_src>

<mosaic_0001>
module attributes {stable_mosaic.version = 11 : i64} {
  func.func @_mlp_kernel(%arg0: i32, %arg1: memref<2x512xf32, #tpu.memory_space<vmem>>, %arg2: memref<32x2xf32, #tpu.memory_space<vmem>>, %arg3: memref<32x1xf32, #tpu.memory_space<vmem>>, %arg4: memref<3x32x32xf32, #tpu.memory_space<vmem>>, %arg5: memref<3x32x1xf32, #tpu.memory_space<vmem>>, %arg6: memref<2x32xf32, #tpu.memory_space<vmem>>, %arg7: memref<2x1xf32, #tpu.memory_space<vmem>>, %arg8: memref<2x512xf32, #tpu.memory_space<vmem>>) attributes {dimension_semantics = [#tpu.dimension_semantics<parallel>], iteration_bounds = array<i64: 2>, scalar_prefetch = 0 : i64, scratch_operands = 0 : i64, tpu.core_type = #tpu.core_type<tc>, window_params = [{transform_indices = @transform_0, window_bounds = array<i64: 2, 512>}, {pipeline_mode = #tpu.pipeline_mode<synchronous>, transform_indices = @transform_1, window_bounds = array<i64: 32, 2>}, {pipeline_mode = #tpu.pipeline_mode<synchronous>, transform_indices = @transform_2, window_bounds = array<i64: 32, 1>}, {pipeline_mode = #tpu.pipeline_mode<synchronous>, transform_indices = @transform_3, window_bounds = array<i64: 3, 32, 32>}, {pipeline_mode = #tpu.pipeline_mode<synchronous>, transform_indices = @transform_4, window_bounds = array<i64: 3, 32, 1>}, {pipeline_mode = #tpu.pipeline_mode<synchronous>, transform_indices = @transform_5, window_bounds = array<i64: 2, 32>}, {pipeline_mode = #tpu.pipeline_mode<synchronous>, transform_indices = @transform_6, window_bounds = array<i64: 2, 1>}, {transform_indices = @transform_7, window_bounds = array<i64: 2, 512>}]} {
    %c0 = arith.constant 0 : index
    %c0_0 = arith.constant 0 : index
    %0 = vector.load %arg2[%c0, %c0_0] : memref<32x2xf32, #tpu.memory_space<vmem>>, vector<32x2xf32>
    %c0_1 = arith.constant 0 : index
    %c0_2 = arith.constant 0 : index
    %1 = vector.load %arg3[%c0_1, %c0_2] : memref<32x1xf32, #tpu.memory_space<vmem>>, vector<32x1xf32>
    %c0_3 = arith.constant 0 : index
    %c0_4 = arith.constant 0 : index
    %c0_5 = arith.constant 0 : index
    %2 = vector.load %arg4[%c0_3, %c0_4, %c0_5] : memref<3x32x32xf32, #tpu.memory_space<vmem>>, vector<1x32x32xf32>
    %3 = vector.shape_cast %2 : vector<1x32x32xf32> to vector<32x32xf32>
    %c1 = arith.constant 1 : index
    %c0_6 = arith.constant 0 : index
    %c0_7 = arith.constant 0 : index
    %4 = vector.load %arg4[%c1, %c0_6, %c0_7] : memref<3x32x32xf32, #tpu.memory_space<vmem>>, vector<1x32x32xf32>
    %5 = vector.shape_cast %4 : vector<1x32x32xf32> to vector<32x32xf32>
    %c2 = arith.constant 2 : index
    %c0_8 = arith.constant 0 : index
    %c0_9 = arith.constant 0 : index
    %6 = vector.load %arg4[%c2, %c0_8, %c0_9] : memref<3x32x32xf32, #tpu.memory_space<vmem>>, vector<1x32x32xf32>
    %7 = vector.shape_cast %6 : vector<1x32x32xf32> to vector<32x32xf32>
    %c0_10 = arith.constant 0 : index
    %c0_11 = arith.constant 0 : index
    %c0_12 = arith.constant 0 : index
    %8 = vector.load %arg5[%c0_10, %c0_11, %c0_12] : memref<3x32x1xf32, #tpu.memory_space<vmem>>, vector<1x32x1xf32>
    %9 = vector.shape_cast %8 : vector<1x32x1xf32> to vector<32x1xf32>
    %c1_13 = arith.constant 1 : index
    %c0_14 = arith.constant 0 : index
    %c0_15 = arith.constant 0 : index
    %10 = vector.load %arg5[%c1_13, %c0_14, %c0_15] : memref<3x32x1xf32, #tpu.memory_space<vmem>>, vector<1x32x1xf32>
    %11 = vector.shape_cast %10 : vector<1x32x1xf32> to vector<32x1xf32>
    %c2_16 = arith.constant 2 : index
    %c0_17 = arith.constant 0 : index
    %c0_18 = arith.constant 0 : index
    %12 = vector.load %arg5[%c2_16, %c0_17, %c0_18] : memref<3x32x1xf32, #tpu.memory_space<vmem>>, vector<1x32x1xf32>
    %13 = vector.shape_cast %12 : vector<1x32x1xf32> to vector<32x1xf32>
    %c0_19 = arith.constant 0 : index
    %c0_20 = arith.constant 0 : index
    %14 = vector.load %arg6[%c0_19, %c0_20] : memref<2x32xf32, #tpu.memory_space<vmem>>, vector<2x32xf32>
    %c0_21 = arith.constant 0 : index
    %c0_22 = arith.constant 0 : index
    %15 = vector.load %arg7[%c0_21, %c0_22] : memref<2x1xf32, #tpu.memory_space<vmem>>, vector<2x1xf32>
    %c0_23 = arith.constant 0 : index
    %c0_24 = arith.constant 0 : index
    %16 = vector.load %arg1[%c0_23, %c0_24] : memref<2x512xf32, #tpu.memory_space<vmem>>, vector<2x256xf32>
    %17 = vector.extract_strided_slice %0 {offsets = [0, 0], sizes = [32, 1], strides = [1, 1]} : vector<32x2xf32> to vector<32x1xf32>
    %18 = vector.extract_strided_slice %16 {offsets = [0, 0], sizes = [1, 256], strides = [1, 1]} : vector<2x256xf32> to vector<1x256xf32>
    %19 = vector.broadcast %17 : vector<32x1xf32> to vector<32x256xf32>
    %20 = vector.broadcast %18 : vector<1x256xf32> to vector<32x256xf32>
    %21 = arith.mulf %19, %20 : vector<32x256xf32>
    %22 = vector.extract_strided_slice %0 {offsets = [0, 1], sizes = [32, 1], strides = [1, 1]} : vector<32x2xf32> to vector<32x1xf32>
    %23 = vector.extract_strided_slice %16 {offsets = [1, 0], sizes = [1, 256], strides = [1, 1]} : vector<2x256xf32> to vector<1x256xf32>
    %24 = vector.broadcast %22 : vector<32x1xf32> to vector<32x256xf32>
    %25 = vector.broadcast %23 : vector<1x256xf32> to vector<32x256xf32>
    %26 = arith.mulf %24, %25 : vector<32x256xf32>
    %27 = arith.addf %21, %26 : vector<32x256xf32>
    %28 = vector.broadcast %1 : vector<32x1xf32> to vector<32x256xf32>
    %29 = arith.addf %27, %28 : vector<32x256xf32>
    %cst = arith.constant dense<0.000000e+00> : vector<32x256xf32>
    %30 = tpu.matmul %3, %29, %cst {dimension_numbers = #tpu.dot_dimension_numbers<[1], [0], [0], [1], [0, 0, 1, 1], [], []>} : vector<32x32xf32>, vector<32x256xf32>, vector<32x256xf32> -> vector<32x256xf32>
    %31 = vector.broadcast %9 : vector<32x1xf32> to vector<32x256xf32>
    %32 = arith.addf %30, %31 : vector<32x256xf32>
    %33 = math.tanh %32 : vector<32x256xf32>
    %cst_25 = arith.constant dense<0.000000e+00> : vector<32x256xf32>
    %34 = tpu.matmul %5, %33, %cst_25 {dimension_numbers = #tpu.dot_dimension_numbers<[1], [0], [0], [1], [0, 0, 1, 1], [], []>} : vector<32x32xf32>, vector<32x256xf32>, vector<32x256xf32> -> vector<32x256xf32>
    %35 = vector.broadcast %11 : vector<32x1xf32> to vector<32x256xf32>
    %36 = arith.addf %34, %35 : vector<32x256xf32>
    %37 = math.tanh %36 : vector<32x256xf32>
    %cst_26 = arith.constant dense<0.000000e+00> : vector<32x256xf32>
    %38 = tpu.matmul %7, %37, %cst_26 {dimension_numbers = #tpu.dot_dimension_numbers<[1], [0], [0], [1], [0, 0, 1, 1], [], []>} : vector<32x32xf32>, vector<32x256xf32>, vector<32x256xf32> -> vector<32x256xf32>
    %39 = vector.broadcast %13 : vector<32x1xf32> to vector<32x256xf32>
    %40 = arith.addf %38, %39 : vector<32x256xf32>
    %41 = math.tanh %40 : vector<32x256xf32>
    %cst_27 = arith.constant dense<0.000000e+00> : vector<2x256xf32>
    %42 = tpu.matmul %14, %41, %cst_27 {dimension_numbers = #tpu.dot_dimension_numbers<[1], [0], [0], [1], [0, 0, 1, 1], [], []>} : vector<2x32xf32>, vector<32x256xf32>, vector<2x256xf32> -> vector<2x256xf32>
    %43 = vector.broadcast %15 : vector<2x1xf32> to vector<2x256xf32>
    %44 = arith.addf %42, %43 : vector<2x256xf32>
    %c0_28 = arith.constant 0 : index
    %c0_29 = arith.constant 0 : index
    %45 = vector.load %arg8[%c0_28, %c0_29] : memref<2x512xf32, #tpu.memory_space<vmem>>, vector<2x256xf32>
    tpu.vector_store %arg8[%c0_28, %c0_29], %44 {strides = array<i32>} : memref<2x512xf32, #tpu.memory_space<vmem>>, vector<2x256xf32>,
    %c0_30 = arith.constant 0 : index
    %c256 = arith.constant 256 : index
    %46 = vector.load %arg1[%c0_30, %c256] : memref<2x512xf32, #tpu.memory_space<vmem>>, vector<2x256xf32>
    %47 = vector.extract_strided_slice %0 {offsets = [0, 0], sizes = [32, 1], strides = [1, 1]} : vector<32x2xf32> to vector<32x1xf32>
    %48 = vector.extract_strided_slice %46 {offsets = [0, 0], sizes = [1, 256], strides = [1, 1]} : vector<2x256xf32> to vector<1x256xf32>
    %49 = vector.broadcast %47 : vector<32x1xf32> to vector<32x256xf32>
    %50 = vector.broadcast %48 : vector<1x256xf32> to vector<32x256xf32>
    %51 = arith.mulf %49, %50 : vector<32x256xf32>
    %52 = vector.extract_strided_slice %0 {offsets = [0, 1], sizes = [32, 1], strides = [1, 1]} : vector<32x2xf32> to vector<32x1xf32>
    %53 = vector.extract_strided_slice %46 {offsets = [1, 0], sizes = [1, 256], strides = [1, 1]} : vector<2x256xf32> to vector<1x256xf32>
    %54 = vector.broadcast %52 : vector<32x1xf32> to vector<32x256xf32>
    %55 = vector.broadcast %53 : vector<1x256xf32> to vector<32x256xf32>
    %56 = arith.mulf %54, %55 : vector<32x256xf32>
    %57 = arith.addf %51, %56 : vector<32x256xf32>
    %58 = vector.broadcast %1 : vector<32x1xf32> to vector<32x256xf32>
    %59 = arith.addf %57, %58 : vector<32x256xf32>
    %cst_31 = arith.constant dense<0.000000e+00> : vector<32x256xf32>
    %60 = tpu.matmul %3, %59, %cst_31 {dimension_numbers = #tpu.dot_dimension_numbers<[1], [0], [0], [1], [0, 0, 1, 1], [], []>} : vector<32x32xf32>, vector<32x256xf32>, vector<32x256xf32> -> vector<32x256xf32>
    %61 = vector.broadcast %9 : vector<32x1xf32> to vector<32x256xf32>
    %62 = arith.addf %60, %61 : vector<32x256xf32>
    %63 = math.tanh %62 : vector<32x256xf32>
    %cst_32 = arith.constant dense<0.000000e+00> : vector<32x256xf32>
    %64 = tpu.matmul %5, %63, %cst_32 {dimension_numbers = #tpu.dot_dimension_numbers<[1], [0], [0], [1], [0, 0, 1, 1], [], []>} : vector<32x32xf32>, vector<32x256xf32>, vector<32x256xf32> -> vector<32x256xf32>
    %65 = vector.broadcast %11 : vector<32x1xf32> to vector<32x256xf32>
    %66 = arith.addf %64, %65 : vector<32x256xf32>
    %67 = math.tanh %66 : vector<32x256xf32>
    %cst_33 = arith.constant dense<0.000000e+00> : vector<32x256xf32>
    %68 = tpu.matmul %7, %67, %cst_33 {dimension_numbers = #tpu.dot_dimension_numbers<[1], [0], [0], [1], [0, 0, 1, 1], [], []>} : vector<32x32xf32>, vector<32x256xf32>, vector<32x256xf32> -> vector<32x256xf32>
    %69 = vector.broadcast %13 : vector<32x1xf32> to vector<32x256xf32>
    %70 = arith.addf %68, %69 : vector<32x256xf32>
    %71 = math.tanh %70 : vector<32x256xf32>
    %cst_34 = arith.constant dense<0.000000e+00> : vector<2x256xf32>
    %72 = tpu.matmul %14, %71, %cst_34 {dimension_numbers = #tpu.dot_dimension_numbers<[1], [0], [0], [1], [0, 0, 1, 1], [], []>} : vector<2x32xf32>, vector<32x256xf32>, vector<2x256xf32> -> vector<2x256xf32>
    %73 = vector.broadcast %15 : vector<2x1xf32> to vector<2x256xf32>
    %74 = arith.addf %72, %73 : vector<2x256xf32>
    %c0_35 = arith.constant 0 : index
    %c256_36 = arith.constant 256 : index
    %75 = vector.load %arg8[%c0_35, %c256_36] : memref<2x512xf32, #tpu.memory_space<vmem>>, vector<2x256xf32>
    tpu.vector_store %arg8[%c0_35, %c256_36], %74 {strides = array<i32>} : memref<2x512xf32, #tpu.memory_space<vmem>>, vector<2x256xf32>,
    return
  }
  func.func @transform_0(%arg0: i32) -> (i32, i32) {
    %c0_i32 = arith.constant 0 : i32
    %c0_i32_0 = arith.constant 0 : i32
    return %c0_i32, %arg0 : i32, i32
  }
  func.func @transform_1(%arg0: i32) -> (i32, i32) {
    %c0_i32 = arith.constant 0 : i32
    %c0_i32_0 = arith.constant 0 : i32
    %c0_i32_1 = arith.constant 0 : i32
    return %c0_i32, %c0_i32_0 : i32, i32
  }
  func.func @transform_2(%arg0: i32) -> (i32, i32) {
    %c0_i32 = arith.constant 0 : i32
    %c0_i32_0 = arith.constant 0 : i32
    %c0_i32_1 = arith.constant 0 : i32
    return %c0_i32, %c0_i32_0 : i32, i32
  }
  func.func @transform_3(%arg0: i32) -> (i32, i32, i32) {
    %c0_i32 = arith.constant 0 : i32
    %c0_i32_0 = arith.constant 0 : i32
    %c0_i32_1 = arith.constant 0 : i32
    %c0_i32_2 = arith.constant 0 : i32
    return %c0_i32, %c0_i32_0, %c0_i32_1 : i32, i32, i32
  }
  func.func @transform_4(%arg0: i32) -> (i32, i32, i32) {
    %c0_i32 = arith.constant 0 : i32
    %c0_i32_0 = arith.constant 0 : i32
    %c0_i32_1 = arith.constant 0 : i32
    %c0_i32_2 = arith.constant 0 : i32
    return %c0_i32, %c0_i32_0, %c0_i32_1 : i32, i32, i32
  }
  func.func @transform_5(%arg0: i32) -> (i32, i32) {
    %c0_i32 = arith.constant 0 : i32
    %c0_i32_0 = arith.constant 0 : i32
    %c0_i32_1 = arith.constant 0 : i32
    return %c0_i32, %c0_i32_0 : i32, i32
  }
  func.func @transform_6(%arg0: i32) -> (i32, i32) {
    %c0_i32 = arith.constant 0 : i32
    %c0_i32_0 = arith.constant 0 : i32
    %c0_i32_1 = arith.constant 0 : i32
    return %c0_i32, %c0_i32_0 : i32, i32
  }
  func.func @transform_7(%arg0: i32) -> (i32, i32) {
    %c0_i32 = arith.constant 0 : i32
    %c0_i32_0 = arith.constant 0 : i32
    return %c0_i32, %arg0 : i32, i32
  }
}

</mosaic_0001>

<bundles_post_ra>
// kernel: mlp_forward.1
= control target key start
LH: loop header
LB: loop body
LE: loop exit
PB: predicated region body
PF: predicated region fallthrough
CT: control target
= control target key end

     0   :  { %12 = vsyncpa [#allocation3], 0  ;;  %s2306_s0 = inlined_call_operand.vmem [shape: f32[2,1024], index: 0, kind: input, shape index: {}]   ;;  %s2307_s1 = inlined_call_operand.vmem [shape: f32[32,2], index: 1, kind: input, shape index: {}]   ;;  %s2308_s2 = inlined_call_operand.vmem [shape: f32[32,1], index: 2, kind: input, shape index: {}]   ;;  %s2309_s3 = inlined_call_operand.vmem [shape: f32[3,32,32], index: 3, kind: input, shape index: {}]   ;;  %s2310_s4 = inlined_call_operand.vmem [shape: f32[3,32,1], index: 4, kind: input, shape index: {}]   ;;  %s2311_s5 = inlined_call_operand.vmem [shape: f32[2,32], index: 5, kind: input, shape index: {}]   ;;  %s2312_s6 = inlined_call_operand.vmem [shape: f32[2,1], index: 6, kind: input, shape index: {}]   ;;  %s2313_s7 = inlined_call_operand.hbm [shape: f32[2,1024], index: 7, kind: output, shape index: {}]  }
   0x1   :  { %14 = vsyncpa [#allocation3 + $0x1], 0  ;;  %s1814_s24 = smov 0   ;;  %s1816_s25 = smov 0  }
   0x2   :  { %s1818_s26 = smov 0   ;;  %s1820_s27 = smov 0  }
   0x3 LB: > { %s1835_s28 = sadd.s32 4294967295, %s1768_s27   ;;  %s1441_s29 = sadd.s32 4294967294, %s1768_s27   ;;  %s1768_s27 = sphi %s1820_s27, %s2319_s27   ;;  %s1764_s26 = sphi %s1818_s26, %s2318_s26   ;;  %s1760_s25 = sphi %s1816_s25, %s2317_s25   ;;  %s1756_s24 = sphi %s1814_s24, %s2316_s24  }
   0x4   : > { %s1839_s30 = sadd.s32 1, %s1768_s27   ;;  %s179_s8 = sadd.s32 1, %s1764_s26 }
   0x5   : > { %s176_s9 = ssub.s32 %s1768_s27, %s1839_s30  ;;  %p189_p0 = scmp.ne.s32.totalorder %s1764_s26, %s1760_s25 }
   0x6   : > { %p177_p1 = scmp.eq.s32.totalorder %s176_s9, 0  ;;  %p190_p2 = scmp.eq.s32.totalorder %s1835_s28, 1 }
   0x7   : > { %p195_p3 = scmp.ne.s32.totalorder %s1760_s25, %s1756_s24  ;;  %p196_p4 = scmp.eq.s32.totalorder %s1441_s29, 1 }
   0x8   : > { %s1850_s10 = scalar_select %p177_p1, %s1764_s26, %s179_s8  }
   0x9   : > { %p1852_p5 = por %p190_p2, %p189_p0  ;;  %p1856_p6 = por %p196_p4, %p195_p3 }
   0xa   : > { %p1444_p7 = scmp.ge.s32.totalorder %s1768_s27, 1  ;;  %p241_p8 = scmp.lt.s32.totalorder %s1768_s27, 3 }
   0xc   : > { %p242_p9 = pnand %p1444_p7, %p241_p8 }
   0xd   : > { %v282_v0 = vld [vmem:[%s2307_s1 + $0x10] sm:$0xff] (!%p242_p9)  ;;  %v280_v1 = vld [vmem:[%s2307_s1] sm:$0xff] (!%p242_p9)  ;;  %v340_v2 = vlaneseq (!%p242_p9)  ;;  %s1446_s17 = sshll.u32 (!%p242_p9), %s1835_s28, 2  ;;  %v1770_v3 = vmov (!%p242_p9), 1   ;;  %v281_v5 = vld [vmem:[%s2307_s1 + $0x8] sm:$0xff] (!%p242_p9)  ;;  %v1771_v10 = vmov (!%p242_p9), 0  }
   0xe   : > { %245 = sbr.rel (%p242_p9) target bundleno = 1881 (0x759), region = 48  ;;  %1606 = vset.pattern.permute.xlu0 (!%p242_p9), %v1770_v3  ;;  %1604 = vset.pattern.permute.xlu1 (!%p242_p9), %v1770_v3  ;;  %p274_p10 = scmp.lt.s32.totalorder (!%p242_p9), %s1446_s17, 7  ;;  %v283_v12 = vld [vmem:[%s2307_s1 + $0x18] sm:$0xff] (!%p242_p9)  ;;  %v285_v21 = vld [vmem:[%s2308_s2 + $0x8] sm:$0xff] (!%p242_p9)  ;;  %v284_v22 = vld [vmem:[%s2308_s2] sm:$0xff] (!%p242_p9)  ;;  %v1772_v31 = vmov (!%p242_p9), 0.0  }
   0xf   : > { %375 = vperm.xlu0 (!%p242_p9), %1606, %v282_v0   ;;  %367 = vperm.xlu1 (!%p242_p9), %1604, %v280_v1   ;;  %v1869_v4 = vshrl.u32 (!%p242_p9), %v340_v2, 7  ;;  %v302_v23 = vld [vmem:[%s2310_s4] sm:$0xff] (!%p242_p9)  ;;  %v286_v24 = vld [vmem:[%s2308_s2 + $0x10] sm:$0xff] (!%p242_p9)  ;;  %v287_v26 = vld [vmem:[%s2308_s2 + $0x18] sm:$0xff] (!%p242_p9)  ;;  %vm464_vm0 = vcmask (!%p242_p9), 261120   ;;  %s270_s18 = sand.u32 (!%p242_p9), 1, %s1760_s25  }
  0x10   : > { %v304_v25 = vld [vmem:[%s2310_s4 + $0x10] sm:$0xff] (!%p242_p9)  ;;  %v1456_v27 = vld [vmem:[%s2310_s4 + $0x20] sm:$0xff] (!%p242_p9)  ;;  %v303_v28 = vld [vmem:[%s2310_s4 + $0x8] sm:$0xff] (!%p242_p9)  ;;  %541 = vmatprep.mubr.f32.mxu0 (!%p242_p9), %v1772_v31  ;;  %670 = vmatprep.mubr.f32.mxu1 (!%p242_p9), %v1772_v31  ;;  %s1445_s19 = sshll.u32 (!%p242_p9), %s270_s18, 3  ;;  %s1368_s9 = scalar_lea.sflag (!%p242_p9), [#allocation3], %s270_s18 }
  0x11   : > { %v1875_v6 = vsub.s32 (!%p242_p9), 1, %v1869_v4  ;;  %v388_v7 = vsub.s32 (!%p242_p9), 3, %v1869_v4  ;;  %v1879_v8 = vsub.s32 (!%p242_p9), 0, %v1869_v4  ;;  %v346_v9 = vsub.s32 (!%p242_p9), 2, %v1869_v4  ;;  %v1458_v29 = vld [vmem:[%s2310_s4 + $0x30] sm:$0xff] (!%p242_p9)  ;;  %v305_v30 = vld [vmem:[%s2310_s4 + $0x18] sm:$0xff] (!%p242_p9) }
  0x12   : > { %v1460_v32 = vld [vmem:[%s2310_s4 + $0x40] sm:$0xff] (!%p242_p9)  ;;  %v1457_v33 = vld [vmem:[%s2310_s4 + $0x28] sm:$0xff] (!%p242_p9)  ;;  %v1462_v34 = vld [vmem:[%s2310_s4 + $0x50] sm:$0xff] (!%p242_p9) }
  0x13   : > { %1607 = vset.pattern.permute.xlu0 (!%p242_p9), %v1771_v10  ;;  %371 = vperm.xlu1 (!%p242_p9), %1604, %v281_v5   ;;  %v1459_v35 = vld [vmem:[%s2310_s4 + $0x38] sm:$0xff] (!%p242_p9)  ;;  %v317_v36 = vld [vmem:[%s2312_s6] sm:$0x3] (!%p242_p9)  ;;  %v1461_v37 = vld [vmem:[%s2310_s4 + $0x48] sm:$0xff] (!%p242_p9) }
  0x14   : > { %321 = vperm.xlu0 (!%p242_p9), %1607, %v280_v1   ;;  %v1463_v38 = vld [vmem:[%s2310_s4 + $0x58] sm:$0xff] (!%p242_p9) }
  0x15   : > { %s2321_s17 = smov (!%p274_p10, %s1446_s17), 7 }
  0x16   : > { %s1447_s20 = sshll.u32 %s2321_s17, 1 }
  0x17   : > { %s1885_s23 = scalar_lea.vmem %s2306_s0, %s1447_s20  ;;  %1605 = vset.pattern.permute.xlu1 %v1771_v10  ;;  %s1497_s20 = sshll.u32 %s1835_s28, 7 }
  0x18   : > { %v923_v11 = vld [vmem:[%s1885_s23 + $0x4] sm:$0xf]  ;;  %326 = vperm.xlu0 %1607, %v281_v5   ;;  %336 = vperm.xlu1 %1605, %v283_v12   ;;  %v318_v46 = vld [vmem:[%s1885_s23] sm:$0xf]  ;;  %s2202_s23 = scalar_lea.vmem [#allocation2], %s1445_s19  ;;  %s2261_s8 = scalar_lea.hbm %s2313_s7, %s1497_s20 }
  0x19   : > { %v954_v13 = vrot.slane %v923_v11, %v1875_v6  ;;  %v958_v14 = vrot.slane %v923_v11, %v388_v7  ;;  %v928_v15 = vrot.slane %v923_v11, %v1879_v8  ;;  %v932_v16 = vrot.slane %v923_v11, %v346_v9  ;;  %s1382_s21 = sshll.u32 %s2202_s23, 4  ;;  %s1773_s28 = smov [#allocation2]   ;;  %s2263_s21 = int_to_ptr.vmem [resolvable:$true] %s1382_s21 }
  0x1a   : > { %v343_v50 = vrot.slane %v318_v46, %v1879_v8  ;;  %v347_v51 = vrot.slane %v318_v46, %v346_v9  ;;  %v385_v54 = vrot.slane %v318_v46, %v1875_v6  ;;  %v389_v55 = vrot.slane %v318_v46, %v388_v7  ;;  %s1706_s13 = scalar_lea.vmem %s2263_s21, 128  ;;  %s1710_s14 = sshll.u32 %s1773_s28, 4  ;;  %s1711_s14 = int_to_ptr.vmem [resolvable:$false] %s1710_s14 }
  0x1b   : > { %v1898_v17 = vrot.slane %v954_v13, %v1875_v6  ;;  %v1901_v18 = vrot.slane %v958_v14, %v1875_v6  ;;  %v1904_v19 = vrot.slane %v928_v15, %v1879_v8  ;;  %v1907_v20 = vrot.slane %v932_v16, %v1879_v8  ;;  %p1707_p11 = scmp.ne.s32.totalorder %s2263_s21, %s1706_s13  ;;  %s1712_s15 = scalar_lea.vmem %s1711_s14, 256 }
  0x1c   : > { %331 = vperm.xlu0 %1607, %v282_v0   ;;  %1608 = vset.pattern.permute.xlu1 %v1770_v3  ;;  %v353_v60 = vrot.slane %v343_v50, %v1879_v8  ;;  %v357_v61 = vrot.slane %v347_v51, %v1879_v8  ;;  %v395_v2 = vrot.slane %v385_v54, %v1875_v6  ;;  %p1713_p0 = scmp.lt.s32.totalorder %s2263_s21, %s1711_s14  ;;  %p1714_p1 = scmp.lt.s32.totalorder %s1712_s15, %s1706_s13 }
  0x1d   : > { %379 = vperm.xlu1 %1608, %v283_v12   ;;  %v399_v3 = vrot.slane %v389_v55, %v1875_v6  ;;  %p1708_p12 = pnand %p1707_p11, %p1852_p5 }
  0x1e   : > { %p1715_p2 = por %p1714_p1, %p1713_p0 }
  0x1f   : > { %p1709_p13 = pneg %p1708_p12 }
  0x20   : > { %423 = vperm.xlu0 %1607, %v285_v21  }
  0x21   : > { %1609 = vset.pattern.permute.xlu1 %v1771_v10  ;;  %p1716_p3 = pnand %p1715_p2, %p1709_p13 }
  0x22   : > { %418 = vperm.xlu1 %1609, %v284_v22  }
  0x24   : > { %446 = vperm.xlu0 %1607, %v302_v23  }
  0x26   : > { %428 = vperm.xlu1 %1609, %v286_v24  }
  0x28   : > { %456 = vperm.xlu0 %1607, %v304_v25  }
  0x2a   : > { %433 = vperm.xlu1 %1609, %v287_v26  }
  0x2c   : > { %576 = vperm.xlu0 %1607, %v1456_v27  }
  0x2e   : > { %451 = vperm.xlu1 %1609, %v303_v28  }
  0x30   : > { %586 = vperm.xlu0 %1607, %v1458_v29  }
  0x32   : > { %461 = vperm.xlu1 %1609, %v305_v30  }
  0x34   : > { %705 = vperm.xlu0 %1607, %v1460_v32  }
  0x36   : > { %581 = vperm.xlu1 %1609, %v1457_v33  }
  0x38   : > { %715 = vperm.xlu0 %1607, %v1462_v34  }
  0x3a   : > { %591 = vperm.xlu1 %1609, %v1459_v35  }
  0x3c   : > { %834 = vperm.xlu0 %1607, %v317_v36  }
  0x3e   : > { %710 = vperm.xlu1 %1609, %v1461_v37  }
  0x42   : > { %720 = vperm.xlu1 %1609, %v1463_v38  }
  0x8e   : > { %v368_v39 = vpop.permute.xlu1 %367  ;;  %v1962_v40 = vpop.permute.xlu0 %375 }
  0x8f   : > { %v969_v41 = vmul.f32 %v1898_v17, %v368_v39  ;;  %v970_v42 = vmul.f32 %v1901_v18, %v368_v39  ;;  %v973_v43 = vmul.f32 %v1898_v17, %v1962_v40  ;;  %v974_v44 = vmul.f32 %v1901_v18, %v1962_v40 }
  0x90   : > { %v400_v23 = vmul.f32 %v395_v2, %v368_v39  ;;  %v401_v6 = vmul.f32 %v399_v3, %v368_v39 }
  0x92   : > { %v372_v45 = vpop.permute.xlu1 %371 }
  0x93   : > { %v971_v47 = vmul.f32 %v1898_v17, %v372_v45  ;;  %v972_v48 = vmul.f32 %v1901_v18, %v372_v45  ;;  %v322_v49 = vpop.permute.xlu0 %321  ;;  %v402_v15 = vmul.f32 %v395_v2, %v372_v45  ;;  %v403_v16 = vmul.f32 %v399_v3, %v372_v45 }
  0x94   : > { %v943_v52 = vmul.f32 %v1904_v19, %v322_v49  ;;  %v944_v53 = vmul.f32 %v1907_v20, %v322_v49  ;;  %v358_v11 = vmul.f32 %v353_v60, %v322_v49  ;;  %v359_v12 = vmul.f32 %v357_v61, %v322_v49 }
  0x95   : > { %v405_v49 = vmul.f32 %v399_v3, %v1962_v40 }
  0x96   : > { %v977_v56 = vadd.f32 %v969_v41, %v943_v52  ;;  %v978_v57 = vadd.f32 %v970_v42, %v944_v53  ;;  %v408_v33 = vadd.f32 %v400_v23, %v358_v11 }
  0x97   : > { %v327_v58 = vpop.permute.xlu0 %326  ;;  %v337_v59 = vpop.permute.xlu1 %336 }
  0x98   : > { %v945_v62 = vmul.f32 %v1904_v19, %v327_v58  ;;  %v946_v63 = vmul.f32 %v1907_v20, %v327_v58  ;;  %v949_v0 = vmul.f32 %v1904_v19, %v337_v59  ;;  %v950_v1 = vmul.f32 %v1907_v20, %v337_v59 }
  0x99   : > { %v360_v7 = vmul.f32 %v353_v60, %v327_v58  ;;  %v361_v9 = vmul.f32 %v357_v61, %v327_v58  ;;  %v364_v51 = vmul.f32 %v353_v60, %v337_v59  ;;  %v365_v52 = vmul.f32 %v357_v61, %v337_v59 }
  0x9a   : > { %v979_v4 = vadd.f32 %v971_v47, %v945_v62  ;;  %v980_v5 = vadd.f32 %v972_v48, %v946_v63  ;;  %v404_v48 = vmul.f32 %v395_v2, %v1962_v40 }
  0x9b   : > { %v332_v10 = vpop.permute.xlu0 %331  ;;  %v411_v27 = vadd.f32 %v403_v16, %v361_v9  ;;  %v410_v28 = vadd.f32 %v402_v15, %v360_v7  ;;  %v2030_v7 = vld [vmem:[%s2309_s3 + $0x8] sm:$0xff]  ;;  %v2038_v9 = vld [vmem:[%s2309_s3 + $0x10] sm:$0xff] }
  0x9c   : > { %v947_v8 = vmul.f32 %v1904_v19, %v332_v10  ;;  %v948_v13 = vmul.f32 %v1907_v20, %v332_v10  ;;  %v380_v14 = vpop.permute.xlu1 %379  ;;  %v409_v20 = vadd.f32 %v401_v6, %v359_v12  ;;  %v362_v39 = vmul.f32 %v353_v60, %v332_v10 }
  0x9d   : > { %v975_v21 = vmul.f32 %v1898_v17, %v380_v14  ;;  %v976_v22 = vmul.f32 %v1901_v18, %v380_v14  ;;  %v363_v41 = vmul.f32 %v357_v61, %v332_v10  ;;  %v406_v42 = vmul.f32 %v395_v2, %v380_v14  ;;  %v2046_v10 = vld [vmem:[%s2309_s3 + $0x18] sm:$0xff] }
  0x9e   : > { %v981_v24 = vadd.f32 %v973_v43, %v947_v8  ;;  %v982_v25 = vadd.f32 %v974_v44, %v948_v13  ;;  %v407_v43 = vmul.f32 %v399_v3, %v380_v14  ;;  %v412_v55 = vadd.f32 %v404_v48, %v362_v39 }
  0x9f   : > { %v424_v26 = vpop.permute.xlu0 %423  ;;  %v983_v29 = vadd.f32 %v975_v21, %v949_v0  ;;  %v984_v30 = vadd.f32 %v976_v22, %v950_v1 }
  0xa0   : > { %v1993_v32 = vadd.f32 %v979_v4, %v424_v26  ;;  %v1995_v19 = vadd.f32 %v980_v5, %v424_v26  ;;  %v439_v35 = vadd.f32 %v424_v26, %v411_v27  ;;  %v438_v17 = vadd.f32 %v424_v26, %v410_v28  ;;  %v2022_v5 = vld [vmem:[%s2309_s3] sm:$0xff] }
  0xa1   : > { %v419_v34 = vpop.permute.xlu1 %418  ;;  %v415_v58 = vadd.f32 %v407_v43, %v365_v52  ;;  %v2094_v52 = vld [vmem:[%s2309_s3 + $0x38] sm:$0xff] }
  0xa2   : > { %v1997_v36 = vadd.f32 %v977_v56, %v419_v34  ;;  %v1999_v18 = vadd.f32 %v978_v57, %v419_v34  ;;  %v437_v37 = vadd.f32 %v419_v34, %v409_v20  ;;  %v436_v38 = vadd.f32 %v419_v34, %v408_v33 }
  0xa3   : > { %v413_v56 = vadd.f32 %v405_v49, %v363_v41  ;;  %v414_v57 = vadd.f32 %v406_v42, %v364_v51  ;;  %v2051_v11 = vpop.permute.xlu0 %446  ;;  %v2070_v49 = vld [vmem:[%s2309_s3 + $0x20] sm:$0xff]  ;;  %v2086_v51 = vld [vmem:[%s2309_s3 + $0x30] sm:$0xff] }
  0xa4   : > { %v1498_v44 = vpack.c.bf16 %v439_v35, %v437_v37  ;;  %v1500_v45 = vpack.c.bf16 %v438_v17, %v436_v38  ;;  %v1530_v46 = vpack.c.bf16 %v1995_v19, %v1999_v18  ;;  %v1532_v47 = vpack.c.bf16 %v1993_v32, %v1997_v36 }
  0xa5   : > { %v429_v50 = vpop.permute.xlu1 %428 }
  0xa6   : > { %v2007_v53 = vadd.f32 %v981_v24, %v429_v50  ;;  %v2009_v54 = vadd.f32 %v982_v25, %v429_v50  ;;  %1499 = vmatprep.subr.bf16.mxu0 %v1498_v44  ;;  %v440_v62 = vadd.f32 %v429_v50, %v412_v55  ;;  %v441_v63 = vadd.f32 %v429_v50, %v413_v56  ;;  %v2078_v50 = vld [vmem:[%s2309_s3 + $0x28] sm:$0xff] }
  0xa7   : > { %1501 = vmatpush1.bf16.msra.mxu0 %v1500_v45  ;;  %v2059_v6 = vpop.permute.xlu0 %456 }
  0xa9   : > { %v434_v0 = vpop.permute.xlu1 %433 }
  0xaa   : > { %v442_v1 = vadd.f32 %v434_v0, %v414_v57  ;;  %v443_v2 = vadd.f32 %v434_v0, %v415_v58  ;;  %v2011_v4 = vadd.f32 %v983_v29, %v434_v0  ;;  %v2013_v40 = vadd.f32 %v984_v30, %v434_v0 }
  0xab   : > { %v2099_v55 = vpop.permute.xlu0 %576 }
  0xac   : > { %v1502_v59 = vpack.c.bf16 %v443_v2, %v441_v63  ;;  %v1504_v60 = vpack.c.bf16 %v442_v1, %v440_v62  ;;  %v1534_v61 = vpack.c.bf16 %v2013_v40, %v2009_v54  ;;  %v1536_v3 = vpack.c.bf16 %v2011_v4, %v2007_v53 }
  0xad   : > { %v2055_v15 = vpop.permute.xlu1 %451 }
  0xae   : > { %1503 = vmatprep.subr.bf16.mxu0 %v1502_v59 }
  0xaf   : > { %1505 = vmatpush1.bf16.msra.mxu0 %v1504_v60  ;;  %v2107_v60 = vpop.permute.xlu0 %586 }
  0xb1   : > { %v2063_v28 = vpop.permute.xlu1 %461 }
  0xb2   : > { %1464 = vmatmul.mubr.msk.f32.vlgmr.msra.gmra.mrb[0].mxu0 %vm464_vm0, %v2022_v5 }
  0xb3   : > { %547 = vmatprep.mubr.f32.mxu0 %v1772_v31 }
  0xb5   : > { %v2103_v63 = vpop.permute.xlu1 %581 }
  0xb6   : > { %1465 = vmatmul.mubr.msk.f32.gmra.mrb[2].mxu0 %vm464_vm0, %v2030_v7 }
  0xb7   : > { %553 = vmatprep.mubr.f32.mxu0 %v1772_v31 }
  0xba   : > { %1466 = vmatmul.mubr.msk.f32.gmra.mrb[4].mxu0 %vm464_vm0, %v2038_v9 }
  0xbb   : > { %559 = vmatprep.mubr.f32.mxu0 %v1772_v31 }
  0xbe   : > { %1467 = vmatmul.mubr.msk.f32.gmra.mrb[6].mxu0 %vm464_vm0, %v2046_v10 }
  0xbf   : > { %799 = vmatprep.mubr.f32.mxu0 %v1772_v31 }
 0x185   : > { %v543_v12 = vpop.f32.mrb[0].mxu0 }
 0x186   : > { %v544_v8 = vadd.f32 %v543_v12, %v2051_v11  ;;  %v545_v13 = vpop.f32.mrb[1].mxu0 }
 0x187   : > { %v546_v14 = vadd.f32 %v545_v13, %v2051_v11 }
 0x188   : > { %1610 = vtanh.f32 %v544_v8 }
 0x189   : > { %v549_v16 = vpop.f32.mrb[2].mxu0  ;;  %1612 = vtanh.f32 %v546_v14 }
 0x18a   : > { %v550_v21 = vadd.f32 %v549_v16, %v2055_v15  ;;  %v551_v22 = vpop.f32.mrb[3].mxu0  ;;  %v2111_v16 = vpop.permute.xlu1 %591 }
 0x18b   : > { %v552_v23 = vadd.f32 %v551_v22, %v2055_v15 }
 0x18c   : > { %1614 = vtanh.f32 %v550_v21 }
 0x18d   : > { %1616 = vtanh.f32 %v552_v23  ;;  %v555_v24 = vpop.f32.mrb[4].mxu0 }
 0x18e   : > { %v556_v25 = vadd.f32 %v555_v24, %v2059_v6  ;;  %v557_v26 = vpop.f32.mrb[5].mxu0 }
 0x18f   : > { %v558_v27 = vadd.f32 %v557_v26, %v2059_v6 }
 0x190   : > { %1618 = vtanh.f32 %v556_v25 }
 0x191   : > { %v561_v29 = vpop.f32.mrb[6].mxu0  ;;  %1620 = vtanh.f32 %v558_v27 }
 0x192   : > { %v562_v30 = vadd.f32 %v561_v29, %v2063_v28  ;;  %v563_v20 = vpop.f32.mrb[7].mxu0  ;;  %v1611_v34 = vpop.eup %1610 }
 0x193   : > { %v564_v33 = vadd.f32 %v563_v20, %v2063_v28  ;;  %v1613_v35 = vpop.eup %1612 }
 0x194   : > { %1622 = vtanh.f32 %v562_v30 }
 0x195   : > { %1624 = vtanh.f32 %v564_v33 }
 0x196   : > { %v1615_v17 = vpop.eup %1614 }
 0x197   : > { %v1617_v37 = vpop.eup %1616  ;;  %v1508_v38 = vpack.c.bf16 %v1615_v17, %v1611_v34 }
 0x198   : > { %v1506_v39 = vpack.c.bf16 %v1617_v37, %v1613_v35 }
 0x19a   : > { %1507 = vmatprep.subr.bf16.mxu1 %v1506_v39  ;;  %v1619_v41 = vpop.eup %1618  ;;  %v2118_v39 = vld [vmem:[%s2309_s3 + $0x40] sm:$0xff] }
 0x19b   : > { %1509 = vmatpush1.bf16.msra.mxu1 %v1508_v38  ;;  %v1621_v42 = vpop.eup %1620 }
 0x19e   : > { %v1623_v43 = vpop.eup %1622 }
 0x19f   : > { %v1625_v44 = vpop.eup %1624  ;;  %v1512_v45 = vpack.c.bf16 %v1623_v43, %v1619_v41  ;;  %v2126_v41 = vld [vmem:[%s2309_s3 + $0x48] sm:$0xff]  ;;  %v2142_v43 = vld [vmem:[%s2309_s3 + $0x58] sm:$0xff] }
 0x1a0   : > { %v1510_v48 = vpack.c.bf16 %v1625_v44, %v1621_v42  ;;  %v2134_v42 = vld [vmem:[%s2309_s3 + $0x50] sm:$0xff]  ;;  %v2147_v44 = vpop.permute.xlu0 %705 }
 0x1a2   : > { %1511 = vmatprep.subr.bf16.mxu1 %v1510_v48 }
 0x1a3   : > { %1513 = vmatpush1.bf16.msra.mxu1 %v1512_v45 }
 0x1a6   : > { %1468 = vmatmul.mubr.msk.f32.vlgmr.msra.gmra.mrb[0].mxu1 %vm464_vm0, %v2070_v49 }
 0x1a7   : > { %676 = vmatprep.mubr.f32.mxu1 %v1772_v31 }
 0x1aa   : > { %1469 = vmatmul.mubr.msk.f32.gmra.mrb[2].mxu1 %vm464_vm0, %v2078_v50 }
 0x1ab   : > { %682 = vmatprep.mubr.f32.mxu1 %v1772_v31 }
 0x1ae   : > { %1470 = vmatmul.mubr.msk.f32.gmra.mrb[4].mxu1 %vm464_vm0, %v2086_v51 }
 0x1af   : > { %688 = vmatprep.mubr.f32.mxu1 %v1772_v31 }
 0x1b2   : > { %1471 = vmatmul.mubr.msk.f32.gmra.mrb[6].mxu1 %vm464_vm0, %v2094_v52 }
 0x1b3   : > { %904 = vmatprep.mubr.f32.mxu1 %v1772_v31 }
 0x279   : > { %v672_v56 = vpop.f32.mrb[0].mxu1 }
 0x27a   : > { %v673_v57 = vadd.f32 %v672_v56, %v2099_v55  ;;  %v674_v58 = vpop.f32.mrb[1].mxu1 }
 0x27b   : > { %v675_v62 = vadd.f32 %v674_v58, %v2099_v55  ;;  %v2151_v58 = vpop.permute.xlu1 %710 }
 0x27c   : > { %1626 = vtanh.f32 %v673_v57 }
 0x27d   : > { %v678_v0 = vpop.f32.mrb[2].mxu1  ;;  %1628 = vtanh.f32 %v675_v62 }
 0x27e   : > { %v679_v1 = vadd.f32 %v678_v0, %v2103_v63  ;;  %v680_v2 = vpop.f32.mrb[3].mxu1 }
 0x27f   : > { %v681_v59 = vadd.f32 %v680_v2, %v2103_v63 }
 0x280   : > { %1630 = vtanh.f32 %v679_v1 }
 0x281   : > { %1632 = vtanh.f32 %v681_v59  ;;  %v684_v12 = vpop.f32.mrb[4].mxu1  ;;  %v2155_v59 = vpop.permute.xlu0 %715 }
 0x282   : > { %v685_v8 = vadd.f32 %v684_v12, %v2107_v60  ;;  %v686_v13 = vpop.f32.mrb[5].mxu1 }
 0x283   : > { %v687_v14 = vadd.f32 %v686_v13, %v2107_v60 }
 0x284   : > { %1634 = vtanh.f32 %v685_v8 }
 0x285   : > { %v690_v21 = vpop.f32.mrb[6].mxu1  ;;  %1636 = vtanh.f32 %v687_v14  ;;  %v2196_v32 = vpop.permute.xlu0 %834 }
 0x286   : > { %v691_v22 = vadd.f32 %v690_v21, %v2111_v16  ;;  %v692_v23 = vpop.f32.mrb[7].mxu1  ;;  %v1627_v25 = vpop.eup %1626 }
 0x287   : > { %v693_v24 = vadd.f32 %v692_v23, %v2111_v16  ;;  %v1629_v26 = vpop.eup %1628  ;;  %v2159_v21 = vpop.permute.xlu1 %720 }
 0x288   : > { %1638 = vtanh.f32 %v691_v22 }
 0x289   : > { %1640 = vtanh.f32 %v693_v24 }
 0x28a   : > { %v1631_v27 = vpop.eup %1630 }
 0x28b   : > { %v1633_v29 = vpop.eup %1632  ;;  %v1516_v30 = vpack.c.bf16 %v1631_v27, %v1627_v25 }
 0x28c   : > { %v1514_v20 = vpack.c.bf16 %v1633_v29, %v1629_v26 }
 0x28e   : > { %1515 = vmatprep.subr.bf16.mxu0 %v1514_v20  ;;  %v1635_v33 = vpop.eup %1634 }
 0x28f   : > { %1517 = vmatpush1.bf16.msra.mxu0 %v1516_v30  ;;  %v1637_v34 = vpop.eup %1636 }
 0x292   : > { %v1639_v35 = vpop.eup %1638 }
 0x293   : > { %v1641_v17 = vpop.eup %1640  ;;  %v1520_v37 = vpack.c.bf16 %v1639_v35, %v1635_v33 }
 0x294   : > { %v1518_v38 = vpack.c.bf16 %v1641_v17, %v1637_v34 }
 0x296   : > { %1519 = vmatprep.subr.bf16.mxu0 %v1518_v38 }
 0x297   : > { %1521 = vmatpush1.bf16.msra.mxu0 %v1520_v37 }
 0x29a   : > { %1472 = vmatmul.mubr.msk.f32.vlgmr.msra.gmra.mrb[8].mxu0 %vm464_vm0, %v2118_v39 }
 0x29b   : > { %805 = vmatprep.mubr.f32.mxu0 %v1772_v31 }
 0x29e   : > { %1473 = vmatmul.mubr.msk.f32.gmra.mrb[10].mxu0 %vm464_vm0, %v2126_v41 }
 0x29f   : > { %811 = vmatprep.mubr.f32.mxu0 %v1772_v31 }
 0x2a2   : > { %1474 = vmatmul.mubr.msk.f32.gmra.mrb[12].mxu0 %vm464_vm0, %v2134_v42 }
 0x2a3   : > { %817 = vmatprep.mubr.f32.mxu0 %v1772_v31 }
 0x2a6   : > { %1475 = vmatmul.mubr.msk.f32.gmra.mrb[14].mxu0 %vm464_vm0, %v2142_v43 }
 0x2a7   : > { %1154 = vmatprep.mubr.f32.mxu0 %v1772_v31 }
 0x36d   : > { %v801_v45 = vpop.f32.mrb[8].mxu0 }
 0x36e   : > { %v802_v48 = vadd.f32 %v801_v45, %v2147_v44  ;;  %v803_v56 = vpop.f32.mrb[9].mxu0 }
 0x36f   : > { %v804_v57 = vadd.f32 %v803_v56, %v2147_v44 }
 0x370   : > { %1642 = vtanh.f32 %v802_v48  ;;  %v2166_v48 = vld [vmem:[%s2311_s5] sm:$0x3] }
 0x371   : > { %v807_v62 = vpop.f32.mrb[10].mxu0  ;;  %1644 = vtanh.f32 %v804_v57 }
 0x372   : > { %v808_v0 = vadd.f32 %v807_v62, %v2151_v58  ;;  %v809_v1 = vpop.f32.mrb[11].mxu0 }
 0x373   : > { %v810_v2 = vadd.f32 %v809_v1, %v2151_v58 }
 0x374   : > { %1646 = vtanh.f32 %v808_v0 }
 0x375   : > { %1648 = vtanh.f32 %v810_v2  ;;  %v813_v12 = vpop.f32.mrb[12].mxu0 }
 0x376   : > { %v814_v8 = vadd.f32 %v813_v12, %v2155_v59  ;;  %v815_v13 = vpop.f32.mrb[13].mxu0 }
 0x377   : > { %v816_v14 = vadd.f32 %v815_v13, %v2155_v59 }
 0x378   : > { %1650 = vtanh.f32 %v814_v8 }
 0x379   : > { %v819_v22 = vpop.f32.mrb[14].mxu0  ;;  %1652 = vtanh.f32 %v816_v14 }
 0x37a   : > { %v820_v23 = vadd.f32 %v819_v22, %v2159_v21  ;;  %v821_v24 = vpop.f32.mrb[15].mxu0  ;;  %v1643_v26 = vpop.eup %1642 }
 0x37b   : > { %v822_v25 = vadd.f32 %v821_v24, %v2159_v21  ;;  %v1645_v27 = vpop.eup %1644 }
 0x37c   : > { %1654 = vtanh.f32 %v820_v23 }
 0x37d   : > { %1656 = vtanh.f32 %v822_v25 }
 0x37e   : > { %v1647_v29 = vpop.eup %1646 }
 0x37f   : > { %v1649_v30 = vpop.eup %1648  ;;  %v1524_v20 = vpack.c.bf16 %v1647_v29, %v1643_v26 }
 0x380   : > { %v1522_v33 = vpack.c.bf16 %v1649_v30, %v1645_v27 }
 0x382   : > { %1523 = vmatprep.subr.bf16.mxu1 %v1522_v33  ;;  %v1651_v34 = vpop.eup %1650 }
 0x383   : > { %1525 = vmatpush1.bf16.msra.mxu1 %v1524_v20  ;;  %v1653_v35 = vpop.eup %1652 }
 0x386   : > { %v1655_v17 = vpop.eup %1654 }
 0x387   : > { %v1657_v37 = vpop.eup %1656  ;;  %v1528_v38 = vpack.c.bf16 %v1655_v17, %v1651_v34 }
 0x388   : > { %v1526_v45 = vpack.c.bf16 %v1657_v37, %v1653_v35 }
 0x38a   : > { %1527 = vmatprep.subr.bf16.mxu1 %v1526_v45 }
 0x38b   : > { %1529 = vmatpush1.bf16.msra.mxu1 %v1528_v38 }
 0x38c   : > { %1531 = vmatprep.subr.bf16.mxu1 %v1530_v46 }
 0x38e   : > { %1476 = vmatmul.mubr.msk.f32.vlgmr.msra.gmra.mrb[8].mxu1 %vm464_vm0, %v2166_v48 }
 0x38f   : > { %1533 = vmatpush1.bf16.msra.mxu1 %v1532_v47  ;;  %1057 = vmatprep.mubr.f32.mxu1 %v1772_v31 }
 0x390   : > { %1535 = vmatprep.subr.bf16.mxu1 %v1534_v61 }
 0x393   : > { %1537 = vmatpush1.bf16.msra.mxu1 %v1536_v3 }
 0x396   : > { %1478 = vmatmul.mubr.msk.f32.vlgmr.msra.gmra.mrb[10].mxu1 %vm464_vm0, %v2022_v5 }
 0x397   : > { %1063 = vmatprep.mubr.f32.mxu1 %v1772_v31 }
 0x39a   : > { %1479 = vmatmul.mubr.msk.f32.gmra.mrb[12].mxu1 %vm464_vm0, %v2030_v7 }
 0x39b   : > { %1069 = vmatprep.mubr.f32.mxu1 %v1772_v31 }
 0x39e   : > { %1480 = vmatmul.mubr.msk.f32.gmra.mrb[14].mxu1 %vm464_vm0, %v2038_v9 }
 0x39f   : > { %1075 = vmatprep.mubr.f32.mxu1 %v1772_v31 }
 0x3a2   : > { %1481 = vmatmul.mubr.msk.f32.gmra.mrb[16].mxu1 %vm464_vm0, %v2046_v10 }
 0x3a3   : > { %1251 = vmatprep.mubr.f32.mxu1 %v1772_v31 }
 0x461   : > { %v906_v19 = vpop.f32.mrb[8].mxu1 }
 0x462   : > { %v907_v36 = vadd.f32 %v906_v19, %v2196_v32  ;;  %v908_v18 = vpop.f32.mrb[9].mxu1 }
 0x463   : > { %v909_v46 = vadd.f32 %v908_v18, %v2196_v32 }
 0x465   : > { %v913_v47 = vcombine.low %v907_v36, %v909_v46 }
 0x467   : > { %1477 = vst.sshfl [vmem:[%s2202_s23] sm:$0x33 pattern:$0x76325410] %v913_v47 }
 0x469   : > { %v1059_v53 = vpop.f32.mrb[10].mxu1 }
 0x46a   : > { %v1060_v54 = vadd.f32 %v1059_v53, %v2051_v11  ;;  %v1061_v4 = vpop.f32.mrb[11].mxu1 }
 0x46b   : > { %v1062_v40 = vadd.f32 %v1061_v4, %v2051_v11 }
 0x46c   : > { %1658 = vtanh.f32 %v1060_v54 }
 0x46d   : > { %v1065_v61 = vpop.f32.mrb[12].mxu1  ;;  %1660 = vtanh.f32 %v1062_v40 }
 0x46e   : > { %v1066_v3 = vadd.f32 %v1065_v61, %v2055_v15  ;;  %v1067_v5 = vpop.f32.mrb[13].mxu1 }
 0x46f   : > { %v1068_v7 = vadd.f32 %v1067_v5, %v2055_v15 }
 0x470   : > { %1662 = vtanh.f32 %v1066_v3 }
 0x471   : > { %1664 = vtanh.f32 %v1068_v7  ;;  %v1071_v9 = vpop.f32.mrb[14].mxu1 }
 0x472   : > { %v1072_v10 = vadd.f32 %v1071_v9, %v2059_v6  ;;  %v1073_v56 = vpop.f32.mrb[15].mxu1 }
 0x473   : > { %v1074_v57 = vadd.f32 %v1073_v56, %v2059_v6 }
 0x474   : > { %1666 = vtanh.f32 %v1072_v10 }
 0x475   : > { %v1077_v62 = vpop.f32.mrb[16].mxu1  ;;  %1668 = vtanh.f32 %v1074_v57 }
 0x476   : > { %v1078_v11 = vadd.f32 %v1077_v62, %v2063_v28  ;;  %v1079_v0 = vpop.f32.mrb[17].mxu1  ;;  %v1659_v2 = vpop.eup %1658 }
 0x477   : > { %v1080_v1 = vadd.f32 %v1079_v0, %v2063_v28  ;;  %v1661_v12 = vpop.eup %1660 }
 0x478   : > { %1670 = vtanh.f32 %v1078_v11 }
 0x479   : > { %1672 = vtanh.f32 %v1080_v1 }
 0x47a   : > { %v1663_v15 = vpop.eup %1662 }
 0x47b   : > { %v1665_v8 = vpop.eup %1664  ;;  %v1540_v13 = vpack.c.bf16 %v1663_v15, %v1659_v2 }
 0x47c   : > { %v1538_v14 = vpack.c.bf16 %v1665_v8, %v1661_v12 }
 0x47e   : > { %1539 = vmatprep.subr.bf16.mxu0 %v1538_v14  ;;  %v1667_v22 = vpop.eup %1666 }
 0x47f   : > { %1541 = vmatpush1.bf16.msra.mxu0 %v1540_v13  ;;  %v1669_v6 = vpop.eup %1668 }
 0x482   : > { %v1671_v23 = vpop.eup %1670 }
 0x483   : > { %v1673_v24 = vpop.eup %1672  ;;  %v1544_v25 = vpack.c.bf16 %v1671_v23, %v1667_v22 }
 0x484   : > { %v1542_v26 = vpack.c.bf16 %v1673_v24, %v1669_v6 }
 0x486   : > { %1543 = vmatprep.subr.bf16.mxu0 %v1542_v26 }
 0x487   : > { %1545 = vmatpush1.bf16.msra.mxu0 %v1544_v25 }
 0x48a   : > { %1482 = vmatmul.mubr.msk.f32.vlgmr.msra.gmra.mrb[16].mxu0 %vm464_vm0, %v2070_v49 }
 0x48b   : > { %1160 = vmatprep.mubr.f32.mxu0 %v1772_v31 }
 0x48e   : > { %1483 = vmatmul.mubr.msk.f32.gmra.mrb[18].mxu0 %vm464_vm0, %v2078_v50 }
 0x48f   : > { %1166 = vmatprep.mubr.f32.mxu0 %v1772_v31 }
 0x492   : > { %1484 = vmatmul.mubr.msk.f32.gmra.mrb[20].mxu0 %vm464_vm0, %v2086_v51 }
 0x493   : > { %1172 = vmatprep.mubr.f32.mxu0 %v1772_v31 }
 0x496   : > { %1485 = vmatmul.mubr.msk.f32.gmra.mrb[22].mxu0 %vm464_vm0, %v2094_v52 }
 0x497   : > { %1348 = vmatprep.mubr.f32.mxu0 %v1772_v31 }
 0x55d   : > { %v1156_v28 = vpop.f32.mrb[16].mxu0 }
 0x55e   : > { %v1157_v49 = vadd.f32 %v1156_v28, %v2099_v55  ;;  %v1158_v27 = vpop.f32.mrb[17].mxu0 }
 0x55f   : > { %v1159_v29 = vadd.f32 %v1158_v27, %v2099_v55 }
 0x560   : > { %1674 = vtanh.f32 %v1157_v49 }
 0x561   : > { %v1162_v30 = vpop.f32.mrb[18].mxu0  ;;  %1676 = vtanh.f32 %v1159_v29 }
 0x562   : > { %v1163_v50 = vadd.f32 %v1162_v30, %v2103_v63  ;;  %v1164_v20 = vpop.f32.mrb[19].mxu0 }
 0x563   : > { %v1165_v51 = vadd.f32 %v1164_v20, %v2103_v63 }
 0x564   : > { %1678 = vtanh.f32 %v1163_v50 }
 0x565   : > { %1680 = vtanh.f32 %v1165_v51  ;;  %v1168_v33 = vpop.f32.mrb[20].mxu0 }
 0x566   : > { %v1169_v52 = vadd.f32 %v1168_v33, %v2107_v60  ;;  %v1170_v34 = vpop.f32.mrb[21].mxu0 }
 0x567   : > { %v1171_v35 = vadd.f32 %v1170_v34, %v2107_v60 }
 0x568   : > { %1682 = vtanh.f32 %v1169_v52 }
 0x569   : > { %v1174_v17 = vpop.f32.mrb[22].mxu0  ;;  %1684 = vtanh.f32 %v1171_v35 }
 0x56a   : > { %v1175_v55 = vadd.f32 %v1174_v17, %v2111_v16  ;;  %v1176_v37 = vpop.f32.mrb[23].mxu0  ;;  %v1675_v45 = vpop.eup %1674 }
 0x56b   : > { %v1177_v38 = vadd.f32 %v1176_v37, %v2111_v16  ;;  %v1677_v19 = vpop.eup %1676 }
 0x56c   : > { %1686 = vtanh.f32 %v1175_v55 }
 0x56d   : > { %1688 = vtanh.f32 %v1177_v38 }
 0x56e   : > { %v1679_v63 = vpop.eup %1678 }
 0x56f   : > { %v1681_v36 = vpop.eup %1680  ;;  %v1548_v18 = vpack.c.bf16 %v1679_v63, %v1675_v45 }
 0x570   : > { %v1546_v46 = vpack.c.bf16 %v1681_v36, %v1677_v19 }
 0x572   : > { %1547 = vmatprep.subr.bf16.mxu1 %v1546_v46  ;;  %v1683_v47 = vpop.eup %1682 }
 0x573   : > { %1549 = vmatpush1.bf16.msra.mxu1 %v1548_v18  ;;  %v1685_v60 = vpop.eup %1684 }
 0x576   : > { %v1687_v53 = vpop.eup %1686 }
 0x577   : > { %v1689_v54 = vpop.eup %1688  ;;  %v1552_v4 = vpack.c.bf16 %v1687_v53, %v1683_v47 }
 0x578   : > { %v1550_v40 = vpack.c.bf16 %v1689_v54, %v1685_v60 }
 0x57a   : > { %1551 = vmatprep.subr.bf16.mxu1 %v1550_v40 }
 0x57b   : > { %1553 = vmatpush1.bf16.msra.mxu1 %v1552_v4 }
 0x57e   : > { %1486 = vmatmul.mubr.msk.f32.vlgmr.msra.gmra.mrb[18].mxu1 %vm464_vm0, %v2118_v39 }
 0x57f   : > { %1257 = vmatprep.mubr.f32.mxu1 %v1772_v31 }
 0x582   : > { %1487 = vmatmul.mubr.msk.f32.gmra.mrb[20].mxu1 %vm464_vm0, %v2126_v41 }
 0x583   : > { %1263 = vmatprep.mubr.f32.mxu1 %v1772_v31 }
 0x586   : > { %1488 = vmatmul.mubr.msk.f32.gmra.mrb[22].mxu1 %vm464_vm0, %v2134_v42 }
 0x587   : > { %1269 = vmatprep.mubr.f32.mxu1 %v1772_v31 }
 0x58a   : > { %1489 = vmatmul.mubr.msk.f32.gmra.mrb[24].mxu1 %vm464_vm0, %v2142_v43 }
 0x651   : > { %v1253_v16 = vpop.f32.mrb[18].mxu1 }
 0x652   : > { %v1254_v61 = vadd.f32 %v1253_v16, %v2147_v44  ;;  %v1255_v3 = vpop.f32.mrb[19].mxu1 }
 0x653   : > { %v1256_v39 = vadd.f32 %v1255_v3, %v2147_v44 }
 0x654   : > { %1690 = vtanh.f32 %v1254_v61 }
 0x655   : > { %v1259_v5 = vpop.f32.mrb[20].mxu1  ;;  %1692 = vtanh.f32 %v1256_v39 }
 0x656   : > { %v1260_v41 = vadd.f32 %v1259_v5, %v2151_v58  ;;  %v1261_v7 = vpop.f32.mrb[21].mxu1 }
 0x657   : > { %v1262_v9 = vadd.f32 %v1261_v7, %v2151_v58 }
 0x658   : > { %1694 = vtanh.f32 %v1260_v41 }
 0x659   : > { %1696 = vtanh.f32 %v1262_v9  ;;  %v1265_v31 = vpop.f32.mrb[22].mxu1 }
 0x65a   : > { %v1266_v42 = vadd.f32 %v1265_v31, %v2155_v59  ;;  %v1267_v43 = vpop.f32.mrb[23].mxu1 }
 0x65b   : > { %v1268_v10 = vadd.f32 %v1267_v43, %v2155_v59 }
 0x65c   : > { %1698 = vtanh.f32 %v1266_v42 }
 0x65d   : > { %v1271_v56 = vpop.f32.mrb[24].mxu1  ;;  %1700 = vtanh.f32 %v1268_v10 }
 0x65e   : > { %v1272_v44 = vadd.f32 %v1271_v56, %v2159_v21  ;;  %v1273_v57 = vpop.f32.mrb[25].mxu1  ;;  %v1691_v11 = vpop.eup %1690 }
 0x65f   : > { %v1274_v62 = vadd.f32 %v1273_v57, %v2159_v21  ;;  %v1693_v0 = vpop.eup %1692 }
 0x660   : > { %1702 = vtanh.f32 %v1272_v44 }
 0x661   : > { %1704 = vtanh.f32 %v1274_v62 }
 0x662   : > { %v1695_v58 = vpop.eup %1694 }
 0x663   : > { %v1697_v1 = vpop.eup %1696  ;;  %v1556_v2 = vpack.c.bf16 %v1695_v58, %v1691_v11 }
 0x664   : > { %v1554_v12 = vpack.c.bf16 %v1697_v1, %v1693_v0 }
 0x666   : > { %1555 = vmatprep.subr.bf16.mxu0 %v1554_v12  ;;  %v1699_v59 = vpop.eup %1698 }
 0x667   : > { %1557 = vmatpush1.bf16.msra.mxu0 %v1556_v2  ;;  %v1701_v15 = vpop.eup %1700 }
 0x66a   : > { %v1703_v8 = vpop.eup %1702 }
 0x66b   : > { %v1705_v13 = vpop.eup %1704  ;;  %v1560_v14 = vpack.c.bf16 %v1703_v8, %v1699_v59 }
 0x66c   : > { %v1558_v21 = vpack.c.bf16 %v1705_v13, %v1701_v15 }
 0x66e   : > { %1559 = vmatprep.subr.bf16.mxu0 %v1558_v21 }
 0x66f   : > { %1561 = vmatpush1.bf16.msra.mxu0 %v1560_v14 }
 0x672   : > { %1490 = vmatmul.mubr.msk.f32.vlgmr.msra.gmra.mrb[24].mxu0 %vm464_vm0, %v2166_v48 }
 0x745   : > { %v1350_v22 = vpop.f32.mrb[24].mxu0 }
 0x746   : > { %v1351_v6 = vadd.f32 %v1350_v22, %v2196_v32  ;;  %v1352_v23 = vpop.f32.mrb[25].mxu0 }
 0x747   : > { %v1353_v24 = vadd.f32 %v1352_v23, %v2196_v32 }
 0x749   : > { %v1357_v25 = vcombine.low %v1351_v6, %v1353_v24 }
 0x74b   : > { %1491 = vst.sshfl [vmem:[%s2202_s23 + $0x4] sm:$0x33 pattern:$0x76325410] %v1357_v25 }
 0x74c   : > { %1719 = shalt.err (!%p1716_p3)
}
 0x74d   : > { %s1720_s16 = scalar_lea.hbm %s2261_s8, 128  ;;  %s1724_s19 = scalar_lea.hbm %s2313_s7, 256 }
 0x74e   : > { %p1721_p4 = scmp.ne.s32.totalorder %s2261_s8, %s1720_s16  ;;  %p1725_p9 = scmp.lt.u32.totalorder %s2261_s8, %s2313_s7 }
 0x74f   : > { %p1726_p10 = scmp.lt.u32.totalorder %s1724_s19, %s1720_s16  ;;  %p1728_p12 = scmp.lt.u32.totalorder %s1720_s16, %s2261_s8 }
 0x750   : > { %p1722_p7 = pnand %p1721_p4, %p1852_p5 }
 0x751   : > { %p1727_p11 = por %p1726_p10, %p1725_p9 }
 0x752   : > { %p1723_p8 = pneg %p1722_p7 }
 0x753   : > { %p1729_p13 = por %p1728_p12, %p1727_p11 }
 0x755   : > { %p1730_p0 = pnand %p1729_p13, %p1723_p8 }
 0x757   : > { %1733 = shalt.err (!%p1730_p0)
}
 0x758   : > { %1562 = dma.vmem_to_hbm [thread:$0]  (%p1852_p5), %s2263_s21, 128, %s2261_s8, %s1368_s9  }
 0x759 PF: > { %p1568_p1 = scmp.ge.s32.totalorder %s1768_s27, 2  ;;  %s1394_s22 = sand.u32 1, %s1756_s24  }
 0x75a   : > { %s1395_s29 = scalar_lea.sflag [#allocation3], %s1394_s22 }
 0x75b   : > { %p1565_p2 = pnand %p1568_p1, %p1856_p6 }
 0x75d   : > { %1751 = dma.done.wait (!%p1565_p2), %s1395_s29, 128  }
 0x75e   : > { %1753 = vsyncadd (!%p1565_p2), %s1395_s29, 4294967168  ;;  %p17_p3 = scmp.ge.s32.totalorder %s1839_s30, 4   ;;  %s2316_s24 = smov %s1760_s25 }
 0x75f   : > { %s2317_s25 = smov %s1764_s26  ;;  %s2318_s26 = smov %s1850_s10 }
 0x760   : > { %s2319_s27 = smov %s1839_s30  ;;  %19 = sbr.rel (!%p17_p3) target bundleno = 3 (0x3), region = 87 }
 0x767   :  { %1400 = vsyncpa [#allocation3], 1 }
 0x768   :  { %1402 = vsyncpa [#allocation3 + $0x1], 1 }

</bundles_post_ra>
